<compile_context>
chip_gen: v6e
topology: v6e:2x2x1
jax: 0.10.0
libtpu: 0.0.40
codegen_flags: <defaults>
</compile_context>

<pallas_src>
import jax
import jax.numpy as jnp
from jax.experimental import pallas as pl
from jax.experimental.pallas import tpu as pltpu

LEAK = 0.2
BN_EPS = 1e-5
COMPUTE_DTYPE = jnp.bfloat16   # MXU-operand dtype for x-tile, w1, w2, h1


def _leaky(x):
    return jnp.where(x >= 0, x, LEAK * x)


# ---------------------------------------------------------------------------
# Stage 1: per-tile Gram statistics of the conv2 *input* activation h1.
# Each (n, t) grid point writes its own (ndf, ndf) Gram block and (ndf, 1) sum block
# -> no resident accumulator, both grid axes are "parallel" (v7x megacore friendly).
# ---------------------------------------------------------------------------
def _stats_kernel(x_ref, w1_ref, b1_ref, g_ref, s_ref):
    x = x_ref[0].astype(COMPUTE_DTYPE)                                  # (Cin, T) bf16
    h1 = jnp.dot(w1_ref[...], x, preferred_element_type=jnp.float32)    # (ndf, T) f32
    h1 = _leaky(h1 + b1_ref[...])                                       # bias (ndf,1) bcast
    h1b = h1.astype(COMPUTE_DTYPE)                                      # bf16 for the MXU
    g_ref[...] = jnp.dot(h1b, h1b.T,
                         preferred_element_type=jnp.float32)[None, None]   # (1,1,ndf,ndf)
    s_ref[...] = jnp.sum(h1, axis=-1, keepdims=True)[None, None]           # (1,1,ndf,1)


# ---------------------------------------------------------------------------
# Stage 2: conv1 -> leaky -> conv2 -> folded BatchNorm (scale/shift) -> leaky -> conv3.
# conv3 is a VPU multiply + sublane reduce; output block (1, 1, T) is lane-dense.
# Per-channel column params are packed in col_ref as (c2, 4): [b1 | scale | shift | w3].
# ---------------------------------------------------------------------------
def _fwd_kernel(x_ref, w1_ref, w2_ref, col_ref, out_ref):
    ndf = w1_ref.shape[0]
    b1 = col_ref[0:ndf, 0:1]                                            # (ndf, 1) f32
    scale = col_ref[:, 1:2]                                             # (c2, 1)
    shift = col_ref[:, 2:3]
    w3 = col_ref[:, 3:4]

    x = x_ref[0].astype(COMPUTE_DTYPE)                                  # (Cin, T) bf16
    h1 = jnp.dot(w1_ref[...], x, preferred_element_type=jnp.float32)    # (ndf, T) f32
    h1 = _leaky(h1 + b1).astype(w2_ref.dtype)                           # bf16
    h2 = jnp.dot(w2_ref[...], h1, preferred_element_type=jnp.float32)   # (c2, T)  f32
    y = _leaky(h2 * scale + shift)                                      # BN + leaky, f32
    out_ref[...] = jnp.sum(y * w3, axis=0, keepdims=True)[None]         # (1, 1, T)


def _pick_tile(hw, max_tile, min_tiles=1):
    """Largest 128-multiple divisor of hw that is <= the cap (and gives >= min_tiles tiles)."""
    cap = max_tile
    if min_tiles > 1:
        cap = min(cap, max(128, hw // min_tiles))
    if hw <= cap:
        return hw
    t = (cap // 128) * 128
    while t >= 128:
        if hw % t == 0:
            return t
        t -= 128
    # TODO(synk): pad the pixel axis (and mask the Gram/sum stats) when HW has no
    # 128-aligned divisor <= cap; falling back to a single full-HW tile for now.
    return hw


def pixel_discriminator_forward(x_nchw, params, *, max_tile_hw=8192,
                                vmem_limit_bytes=48 * 1024 * 1024):
    """x_nchw: (N, Cin, H, W) float32. Returns (N, 1, H, W) float32."""
    w1, b1, w2, gamma, beta, w3 = (
        params["w1"], params["b1"], params["w2"],
        params["gamma"], params["beta"], params["w3"],
    )
    N, Cin, H, W = x_nchw.shape
    HW = H * W
    P = N * HW
    ndf = w1.shape[0]
    c2 = w2.shape[0]

    # When N == 1, force >= 2 pixel tiles so both v7x TensorCores get work.
    tile = _pick_tile(HW, max_tile_hw, min_tiles=2 if N == 1 else 1)
    n_t = HW // tile

    # Pure reshape (no transpose, no dtype pass): channels on sublanes, pixels on lanes.
    x = x_nchw.reshape(N, Cin, HW)
    w1c = w1.astype(COMPUTE_DTYPE)                       # (ndf, Cin)
    w2c = w2.astype(COMPUTE_DTYPE)                       # (c2, ndf)
    b1c = b1.reshape(ndf, 1).astype(jnp.float32)

    x_spec = pl.BlockSpec((1, Cin, tile), lambda n, t: (n, 0, t))
    full2 = lambda shape: pl.BlockSpec(shape, lambda n, t: (0, 0))
    cparams = pltpu.CompilerParams(
        dimension_semantics=("parallel", "parallel"),
        vmem_limit_bytes=vmem_limit_bytes)

    # --- stage 1: per-tile Gram / sum statistics of h1 ------------------------
    g_blk, s_blk = pl.pallas_call(
        _stats_kernel,
        out_shape=(jax.ShapeDtypeStruct((N, n_t, ndf, ndf), jnp.float32),
                   jax.ShapeDtypeStruct((N, n_t, ndf, 1), jnp.float32)),
        grid=(N, n_t),
        in_specs=[
            x_spec,
            full2((ndf, Cin)),
            full2((ndf, 1)),
        ],
        out_specs=[
            pl.BlockSpec((1, 1, ndf, ndf), lambda n, t: (n, t, 0, 0)),
            pl.BlockSpec((1, 1, ndf, 1), lambda n, t: (n, t, 0, 0)),
        ],
        compiler_params=cparams,
    )(x, w1c, b1c)

    # Fold the Gram blocks into BatchNorm (training-mode, biased variance) scale/shift.
    # Use the same bf16-rounded w2 that stage 2 feeds to the MXU.
    w2f = w2c.astype(jnp.float32)                                     # (c2, ndf)
    s_h1 = s_blk[..., 0]                                              # (N, n_t, ndf)
    sum_h2 = jnp.einsum("ck,ntk->ntc", w2f, s_h1)                     # (N, n_t, c2)
    wg = jnp.einsum("ck,ntkl->ntcl", w2f, g_blk)                      # (N, n_t, c2, ndf)
    sumsq_h2 = jnp.einsum("ntcl,cl->ntc", wg, w2f)                    # (N, n_t, c2)

    mean_t = sum_h2 / tile                                            # per-tile means
    m2_t = sumsq_h2 - tile * mean_t * mean_t                          # per-tile centered SS
    mean = jnp.sum(sum_h2, axis=(0, 1)) / P                           # (c2,)
    var = (jnp.sum(m2_t, axis=(0, 1))
           + tile * jnp.sum((mean_t - mean[None, None, :]) ** 2, axis=(0, 1))) / P
    var = jnp.maximum(var, 0.0)
    inv_std = jax.lax.rsqrt(var + BN_EPS)
    scale = gamma * inv_std
    shift = beta - mean * gamma * inv_std

    # Pack per-channel column params into one (c2, 4) f32 block: [b1 | scale | shift | w3].
    cols = jnp.zeros((c2, 4), jnp.float32)
    cols = cols.at[:ndf, 0].set(b1.astype(jnp.float32))
    cols = cols.at[:, 1].set(scale.astype(jnp.float32))
    cols = cols.at[:, 2].set(shift.astype(jnp.float32))
    cols = cols.at[:, 3].set(w3.reshape(c2).astype(jnp.float32))

    # --- stage 2: full forward with folded BN, lane-dense output ---------------
    out = pl.pallas_call(
        _fwd_kernel,
        out_shape=jax.ShapeDtypeStruct((N, 1, HW), jnp.float32),
        grid=(N, n_t),
        in_specs=[
            x_spec,
            full2((ndf, Cin)),
            full2((c2, ndf)),
            full2((c2, 4)),
        ],
        out_specs=pl.BlockSpec((1, 1, tile), lambda n, t: (n, 0, t)),
        compiler_params=cparams,
    )(x, w1c, w2c, cols)

    return out.reshape(N, 1, H, W)


def _reference_forward(x_nchw, params):
    """Pure-JAX reference with the same bf16 quantization of the matmul operands."""
    w1, b1, w2, gamma, beta, w3 = (
        params["w1"], params["b1"], params["w2"],
        params["gamma"], params["beta"], params["w3"],
    )
    N, Cin, H, W = x_nchw.shape
    c2 = w2.shape[0]

    q = lambda a: a.astype(COMPUTE_DTYPE).astype(jnp.float32)
    xq = q(x_nchw.reshape(N, Cin, H * W))
    w1q, w2q = q(w1), q(w2)

    x2d = jnp.transpose(xq, (0, 2, 1)).reshape(-1, Cin)            # (P, Cin)
    h1 = _leaky(jnp.dot(x2d, w1q.T, precision="highest") + b1[None, :])
    h2 = jnp.dot(q(h1), w2q.T, precision="highest")                # (P, c2)

    mean = jnp.mean(h2, axis=0, keepdims=True)
    var = jnp.mean(h2 * h2, axis=0, keepdims=True) - mean * mean
    y = _leaky((h2 - mean) * jax.lax.rsqrt(var + BN_EPS) * gamma[None, :] + beta[None, :])
    out = jnp.sum(y * w3.reshape(1, c2), axis=-1)                  # (P,)
    return out.reshape(N, 1, H, W)


def init_params(key, input_nc, ndf):
    """Deterministic synthetic init; PyTorch-style (out_ch, in_ch) weight layout."""
    k1, k2, k3, k4 = jax.random.split(key, 4)
    c2 = 2 * ndf
    return {
        "w1": 0.1 * jax.random.normal(k1, (ndf, input_nc), jnp.float32),
        "b1": 0.1 * jax.random.normal(k2, (ndf,), jnp.float32),
        "w2": 0.1 * jax.random.normal(k3, (c2, ndf), jnp.float32),
        "gamma": jnp.ones((c2,), jnp.float32),    # BatchNorm2d affine init
        "beta": jnp.zeros((c2,), jnp.float32),
        "w3": 0.1 * jax.random.normal(k4, (1, c2), jnp.float32),
    }


if __name__ == "__main__":
    key = jax.random.PRNGKey(0)
    kx, kp = jax.random.split(key)

    N, Cin, H, W = 2, 4, 16, 16
    ndf = 32

    x = jax.random.normal(kx, (N, Cin, H, W), jnp.float32)
    params = init_params(kp, Cin, ndf)

    out = pixel_discriminator_forward(x, params)
    out = jax.block_until_ready(out)

    ref = _reference_forward(x, params)
    assert out.shape == (N, 1, H, W), out.shape
    max_err = float(jnp.max(jnp.abs(out - ref)))
    # bf16 matmul operands are mirrored in the reference, so residual error is only
    # f32 accumulation-order noise (Gram-vs-direct BN stats, MXU order); 2e-3 is wide margin.
    assert max_err < 2e-3, max_err

    print("KERNEL_OK")
</pallas_src>

<mosaic_0001>
module attributes {stable_mosaic.version = 11 : i64} {
  func.func @_stats_kernel(%arg0: i32, %arg1: i32, %arg2: memref<1x4x256xf32, #tpu.memory_space<vmem>>, %arg3: memref<32x4xbf16, #tpu.memory_space<vmem>>, %arg4: memref<32x1xf32, #tpu.memory_space<vmem>>, %arg5: memref<1x1x32x32xf32, #tpu.memory_space<vmem>>, %arg6: memref<1x1x32x1xf32, #tpu.memory_space<vmem>>) attributes {dimension_semantics = [#tpu.dimension_semantics<parallel>, #tpu.dimension_semantics<parallel>], iteration_bounds = array<i64: 2, 1>, scalar_prefetch = 0 : i64, scratch_operands = 0 : i64, tpu.core_type = #tpu.core_type<tc>, window_params = [{transform_indices = @transform_0, window_bounds = array<i64: 1, 4, 256>}, {pipeline_mode = #tpu.pipeline_mode<synchronous>, transform_indices = @transform_1, window_bounds = array<i64: 32, 4>}, {pipeline_mode = #tpu.pipeline_mode<synchronous>, transform_indices = @transform_2, window_bounds = array<i64: 32, 1>}, {transform_indices = @transform_3, window_bounds = array<i64: 1, 1, 32, 32>}, {transform_indices = @transform_4, window_bounds = array<i64: 1, 1, 32, 1>}]} {
    %c0 = arith.constant 0 : index
    %c0_0 = arith.constant 0 : index
    %c0_1 = arith.constant 0 : index
    %0 = vector.load %arg2[%c0, %c0_0, %c0_1] : memref<1x4x256xf32, #tpu.memory_space<vmem>>, vector<1x4x256xf32>
    %1 = vector.shape_cast %0 : vector<1x4x256xf32> to vector<4x256xf32>
    %2 = arith.truncf %1 : vector<4x256xf32> to vector<4x256xbf16>
    %c0_2 = arith.constant 0 : index
    %c0_3 = arith.constant 0 : index
    %3 = vector.load %arg3[%c0_2, %c0_3] : memref<32x4xbf16, #tpu.memory_space<vmem>>, vector<32x4xbf16>
    %cst = arith.constant dense<0.000000e+00> : vector<32x256xf32>
    %4 = tpu.matmul %3, %2, %cst {dimension_numbers = #tpu.dot_dimension_numbers<[1], [0], [0], [1], [0, 0, 1, 1], [], []>} : vector<32x4xbf16>, vector<4x256xbf16>, vector<32x256xf32> -> vector<32x256xf32>
    %c0_4 = arith.constant 0 : index
    %c0_5 = arith.constant 0 : index
    %5 = vector.load %arg4[%c0_4, %c0_5] : memref<32x1xf32, #tpu.memory_space<vmem>>, vector<32x1xf32>
    %6 = vector.broadcast %5 : vector<32x1xf32> to vector<32x256xf32>
    %7 = arith.addf %4, %6 : vector<32x256xf32>
    %cst_6 = arith.constant 0.000000e+00 : f32
    %8 = vector.broadcast %cst_6 : f32 to vector<32x256xf32>
    %9 = arith.cmpf oge, %7, %8 : vector<32x256xf32>
    %cst_7 = arith.constant 2.000000e-01 : f32
    %10 = vector.broadcast %cst_7 : f32 to vector<32x256xf32>
    %11 = arith.mulf %10, %7 : vector<32x256xf32>
    %12 = arith.select %9, %7, %11 : vector<32x256xi1>, vector<32x256xf32>
    %13 = arith.truncf %12 : vector<32x256xf32> to vector<32x256xbf16>
    %14 = tpu.transpose %13, [1, 0] : vector<32x256xbf16> -> vector<256x32xbf16>
    %cst_8 = arith.constant dense<0.000000e+00> : vector<32x32xf32>
    %15 = tpu.matmul %13, %14, %cst_8 {dimension_numbers = #tpu.dot_dimension_numbers<[1], [0], [0], [1], [0, 0, 1, 1], [], []>} : vector<32x256xbf16>, vector<256x32xbf16>, vector<32x32xf32> -> vector<32x32xf32>
    %16 = vector.shape_cast %15 : vector<32x32xf32> to vector<1x1x32x32xf32>
    %c0_9 = arith.constant 0 : index
    %c0_10 = arith.constant 0 : index
    %c0_11 = arith.constant 0 : index
    %c0_12 = arith.constant 0 : index
    %17 = vector.load %arg5[%c0_9, %c0_10, %c0_11, %c0_12] : memref<1x1x32x32xf32, #tpu.memory_space<vmem>>, vector<1x1x32x32xf32>
    tpu.vector_store %arg5[%c0_9, %c0_10, %c0_11, %c0_12], %16 {strides = array<i32>} : memref<1x1x32x32xf32, #tpu.memory_space<vmem>>, vector<1x1x32x32xf32>,
    %cst_13 = arith.constant dense<0.000000e+00> : vector<32xf32>
    %18 = vector.multi_reduction <add>, %12, %cst_13 [1] : vector<32x256xf32> to vector<32xf32>
    %19 = vector.shape_cast %18 : vector<32xf32> to vector<32x1xf32>
    %20 = vector.shape_cast %19 : vector<32x1xf32> to vector<1x1x32x1xf32>
    %c0_14 = arith.constant 0 : index
    %c0_15 = arith.constant 0 : index
    %c0_16 = arith.constant 0 : index
    %c0_17 = arith.constant 0 : index
    %21 = vector.load %arg6[%c0_14, %c0_15, %c0_16, %c0_17] : memref<1x1x32x1xf32, #tpu.memory_space<vmem>>, vector<1x1x32x1xf32>
    tpu.vector_store %arg6[%c0_14, %c0_15, %c0_16, %c0_17], %20 {strides = array<i32>} : memref<1x1x32x1xf32, #tpu.memory_space<vmem>>, vector<1x1x32x1xf32>,
    return
  }
  func.func @transform_0(%arg0: i32, %arg1: i32) -> (i32, i32, i32) {
    %c0_i32 = arith.constant 0 : i32
    %c0_i32_0 = arith.constant 0 : i32
    return %arg0, %c0_i32, %arg1 : i32, i32, i32
  }
  func.func @transform_1(%arg0: i32, %arg1: i32) -> (i32, i32) {
    %c0_i32 = arith.constant 0 : i32
    %c0_i32_0 = arith.constant 0 : i32
    %c0_i32_1 = arith.constant 0 : i32
    return %c0_i32, %c0_i32_0 : i32, i32
  }
  func.func @transform_2(%arg0: i32, %arg1: i32) -> (i32, i32) {
    %c0_i32 = arith.constant 0 : i32
    %c0_i32_0 = arith.constant 0 : i32
    %c0_i32_1 = arith.constant 0 : i32
    return %c0_i32, %c0_i32_0 : i32, i32
  }
  func.func @transform_3(%arg0: i32, %arg1: i32) -> (i32, i32, i32, i32) {
    %c0_i32 = arith.constant 0 : i32
    %c0_i32_0 = arith.constant 0 : i32
    %c0_i32_1 = arith.constant 0 : i32
    return %arg0, %arg1, %c0_i32, %c0_i32_0 : i32, i32, i32, i32
  }
  func.func @transform_4(%arg0: i32, %arg1: i32) -> (i32, i32, i32, i32) {
    %c0_i32 = arith.constant 0 : i32
    %c0_i32_0 = arith.constant 0 : i32
    %c0_i32_1 = arith.constant 0 : i32
    return %arg0, %arg1, %c0_i32, %c0_i32_0 : i32, i32, i32, i32
  }
}

</mosaic_0001>

<bundles_post_ra>
// kernel: tpu_custom_call.1
= control target key start
LH: loop header
LB: loop body
LE: loop exit
PB: predicated region body
PF: predicated region fallthrough
CT: control target
= control target key end

     0   :  { %10 = vsyncpa [#allocation3], 0  ;;  %s944_s0 = inlined_call_operand.vmem [shape: f32[2,4,256], index: 0, kind: input, shape index: {}]   ;;  %s945_s1 = inlined_call_operand.vmem [shape: bf16[32,4], index: 1, kind: input, shape index: {}]   ;;  %s946_s2 = inlined_call_operand.vmem [shape: f32[32,1], index: 2, kind: input, shape index: {}]   ;;  %s947_s3 = inlined_call_operand.hbm [shape: f32[2,1,32,32], index: 3, kind: output, shape index: {0}]   ;;  %s948_s4 = inlined_call_operand.vmem [shape: f32[2,1,32,1], index: 4, kind: output, shape index: {1}]  }
   0x1   :  { %12 = vsyncpa [#allocation3 + $0x1], 0  ;;  %s805_s15 = smov 0   ;;  %s807_s16 = smov 0  }
   0x2   :  { %s809_s17 = smov 0   ;;  %s811_s18 = smov 0  }
   0x3   :  { %s813_s19 = smov 0   ;;  %s815_s20 = smov 0  }
   0x4 LB: > { %s608_s21 = sadd.s32 4294967295, %s774_s20   ;;  %s609_s22 = sadd.s32 4294967294, %s774_s20   ;;  %s774_s20 = sphi %s815_s20, %s18_s20   ;;  %s770_s19 = sphi %s813_s19, %s955_s19   ;;  %s766_s18 = sphi %s811_s18, %s954_s18   ;;  %s762_s17 = sphi %s809_s17, %s953_s17   ;;  %s758_s16 = sphi %s807_s16, %s952_s16   ;;  %s754_s15 = sphi %s805_s15, %s951_s15  }
   0x5   : > { %s30_s23 = sadd.s32 1, %s770_s19  ;;  %s109_s24 = sadd.s32 1, %s762_s17 }
   0x6   : > { %p32_p0 = scmp.ge.s32.totalorder %s30_s23, 2  ;;  %p119_p1 = scmp.ne.s32.totalorder %s762_s17, %s758_s16 }
   0x7   : > { %p120_p2 = scmp.eq.s32.totalorder %s608_s21, 1  ;;  %p125_p3 = scmp.ne.s32.totalorder %s758_s16, %s754_s15 }
   0x8   : > { %s957_s23 = smov (%p32_p0, %s30_s23), 0  ;;  %p126_p5 = scmp.eq.s32.totalorder %s609_s22, 1 }
   0x9   : > { %p845_p4 = por %p120_p2, %p119_p1  ;;  %s104_s26 = ssub.s32 %s770_s19, %s957_s23 }
   0xa   : > { %p612_p6 = scmp.ge.s32.totalorder %s774_s20, 1  ;;  %p107_p7 = scmp.eq.s32.totalorder %s104_s26, 0 }
   0xb   : > { %p852_p8 = por %p126_p5, %p125_p3  ;;  %p191_p9 = scmp.lt.s32.totalorder %s774_s20, 3 }
   0xc   : > { %s858_s28 = scalar_select %p107_p7, %s762_s17, %s109_s24  }
   0xd   : > { %p192_p10 = pnand %p612_p6, %p191_p9 }
   0xe   : > { %p231_p11 = scmp.lt.s32.totalorder (!%p192_p10), %s766_s18, 1  ;;  %s216_s9 = sand.u32 (!%p192_p10), 1, %s758_s16  }
   0xf   : > { %195 = sbr.rel (%p192_p10) target bundleno = 476 (0x1dc), region = 32  ;;  %s613_s10 = sshll.u32 (!%p192_p10), %s216_s9, 5 }
  0x10   : > { %s218_s11 = scalar_lea.vmem (!%p192_p10), [#allocation2], %s613_s10  ;;  %s777_s24 = smov (!%p192_p10), [#allocation2]  }
  0x11   : > { %s485_s12 = sshll.u32 (!%p192_p10), %s218_s11, 4  ;;  %s702_s26 = sshll.u32 (!%p192_p10), %s777_s24, 4  ;;  %s892_s12 = int_to_ptr.vmem [resolvable:$true] %s485_s12  ;;  %s703_s26 = int_to_ptr.vmem [resolvable:$false] %s702_s26 }
  0x12   : > { %s698_s22 = scalar_lea.vmem (!%p192_p10), %s892_s12, 512  ;;  %s704_s30 = scalar_lea.vmem (!%p192_p10), %s703_s26, 1024 }
  0x13   : > { %p699_p12 = scmp.ne.s32.totalorder (!%p192_p10), %s892_s12, %s698_s22  ;;  %p705_p1 = scmp.lt.s32.totalorder (!%p192_p10), %s892_s12, %s703_s26 }
  0x14   : > { %v776_v0 = vmov 0   ;;  %s862_s29 = scalar_select %p231_p11, %s766_s18, 1  ;;  %v260_v1 = vld [vmem:[%s946_s2] sm:$0xff]  ;;  %v262_v2 = vld [vmem:[%s946_s2 + $0x10] sm:$0xff]  ;;  %v261_v3 = vld [vmem:[%s946_s2 + $0x8] sm:$0xff]  ;;  %vm301_vm0 = vcmask 1041408  }
  0x15   : > { %340 = vmatprep.mubr.bf16.mxu0 %v776_v0  ;;  %694 = vset.pattern.permute.xlu1 %v776_v0  ;;  %v263_v4 = vld [vmem:[%s946_s2 + $0x18] sm:$0xff]  ;;  %v696_v10 = vld [vmem:[%s945_s1] sm:$0xff]   ;;  %vm294_vm1 = vcmask 31744   ;;  %v697_v11 = vld [vmem:[%s945_s1 + $0x8] sm:$0xff]   ;;  %vm455_vm10 = vcmask 7168   ;;  %vm438_vm11 = vcmask 261120   ;;  %p700_p13 = pnand %p699_p12, %p845_p4  ;;  %p706_p2 = scmp.lt.s32.totalorder %s704_s30, %s698_s22 }
  0x16   : > { %693 = vset.pattern.permute.xlu0 %v776_v0  ;;  %266 = vperm.xlu1 %694, %v260_v1   ;;  %s628_s8 = sshll.u32 %s862_s29, 3  ;;  %s629_s5 = sshll.u32 %s862_s29, 5 }
  0x17   : > { %276 = vperm.xlu0 %693, %v262_v2   ;;  %s238_s13 = scalar_lea.vmem %s944_s0, %s628_s8  ;;  %s248_s8 = scalar_lea.vmem %s948_s4, %s629_s5 }
  0x18   : > { %v250_v5 = vld [vmem:[%s238_s13] sm:$0xff]  ;;  %s630_s29 = sshll.u32 %s766_s18, 9  ;;  %s899_s18 = scalar_lea.sflag [#allocation3], %s216_s9 }
  0x19   : > { %v252_v6 = vcombine.high %v250_v5, %v250_v5  ;;  %v254_v7 = vpack.c.bf16 %v250_v5, %v250_v5  ;;  %s897_s21 = scalar_lea.hbm %s947_s3, %s630_s29  ;;  %p701_p0 = pneg %p700_p13 }
  0x1a   : > { %271 = vperm.xlu1 %694, %v261_v3   ;;  %p707_p3 = por %p706_p2, %p705_p1 }
  0x1b   : > { %281 = vperm.xlu0 %693, %v263_v4   ;;  %v255_v8 = vpack.c.bf16 %v252_v6, %v252_v6  ;;  %v303_v9 = vsel %vm301_vm0, %v254_v7, 0 }
  0x1c   : > { %p708_p5 = pnand %p707_p3, %p701_p0 }
  0x1d   : > { %620 = vmatprep.subr.msk.bf16.mxu0 %vm301_vm0, %v255_v8 }
  0x1e   : > { %323 = vmatpush1.bf16.msra.mxu0 %v303_v9 }
  0x21   : > { %621 = vmatmul.mubr.msk.bf16.vlgmr.msra.gmra.mxu0 %vm294_vm1, %v696_v10 }
  0x22   : > { %350 = vmatprep.mubr.bf16.mxu0 %v776_v0 }
  0x29   : > { %622 = vmatmul.mubr.msk.bf16.gmra.mxu0 %vm294_vm1, %v697_v11 }
  0x91   : > { %v267_v12 = vpop.permute.xlu1 %266 }
  0x92   : > { %v277_v22 = vpop.permute.xlu0 %276 }
  0x95   : > { %v272_v16 = vpop.permute.xlu1 %271 }
  0x96   : > { %v282_v37 = vpop.permute.xlu0 %281 }
  0xe1   : > { %v342_v13 = vpop.f32.mrf.mxu0 }
  0xe2   : > { %v343_v14 = vadd.f32 %v342_v13, %v267_v12 }
  0xe3   : > { %v344_v15 = vpop.f32.mrf.mxu0 }
  0xe4   : > { %v369_v17 = vmul.f32 0.2, %v343_v14  ;;  %v345_v18 = vadd.f32 %v344_v15, %v267_v12  ;;  %vm361_vm2 = vcmp.ge.f32.partialorder %v343_v14, 0.0 }
  0xe5   : > { %v346_v19 = vpop.f32.mrf.mxu0 }
  0xe6   : > { %v370_v20 = vmul.f32 0.2, %v345_v18  ;;  %v347_v21 = vadd.f32 %v346_v19, %v272_v16  ;;  %vm362_vm3 = vcmp.ge.f32.partialorder %v345_v18, 0.0  ;;  %v377_v26 = vsel %vm361_vm2, %v343_v14, %v369_v17 }
  0xe7   : > { %v348_v23 = vpop.f32.mrf.mxu0 }
  0xe8   : > { %v371_v24 = vmul.f32 0.2, %v347_v21  ;;  %v349_v25 = vadd.f32 %v348_v23, %v272_v16  ;;  %v378_v27 = vsel %vm362_vm3, %v345_v18, %v370_v20  ;;  %vm363_vm4 = vcmp.ge.f32.partialorder %v347_v21, 0.0 }
  0xe9   : > { %v352_v28 = vpop.f32.mrf.mxu0  ;;  %v443_v29 = vadd.f32 %v378_v27, %v377_v26 }
  0xea   : > { %v372_v30 = vmul.f32 0.2, %v349_v25  ;;  %v353_v31 = vadd.f32 %v352_v28, %v277_v22  ;;  %vm364_vm5 = vcmp.ge.f32.partialorder %v349_v25, 0.0  ;;  %v379_v35 = vsel %vm363_vm4, %v347_v21, %v371_v24 }
  0xeb   : > { %v354_v32 = vpop.f32.mrf.mxu0  ;;  %444 = vadd.xlane.f32.xlu0 %v443_v29  ;;  %v385_v55 = vpack.c.bf16 %v379_v35, %v377_v26 }
  0xec   : > { %v373_v33 = vmul.f32 0.2, %v353_v31  ;;  %v355_v34 = vadd.f32 %v354_v32, %v277_v22  ;;  %v380_v36 = vsel %vm364_vm5, %v349_v25, %v372_v30  ;;  %vm365_vm6 = vcmp.ge.f32.partialorder %v353_v31, 0.0 }
  0xed   : > { %v356_v38 = vpop.f32.mrf.mxu0  ;;  %v446_v39 = vadd.f32 %v380_v36, %v379_v35  ;;  %v386_v40 = vpack.c.bf16 %v380_v36, %v378_v27 }
  0xee   : > { %v374_v41 = vmul.f32 0.2, %v355_v34  ;;  %v357_v42 = vadd.f32 %v356_v38, %v282_v37  ;;  %vm366_vm7 = vcmp.ge.f32.partialorder %v355_v34, 0.0  ;;  %v381_v46 = vsel %vm365_vm6, %v353_v31, %v373_v33 }
  0xef   : > { %v358_v43 = vpop.f32.mrf.mxu0  ;;  %447 = vadd.xlane.f32.xlu1 %v446_v39  ;;  %421 = vmatprep.mubr.bf16.mxu0 %v386_v40 }
  0xf0   : > { %v375_v44 = vmul.f32 0.2, %v357_v42  ;;  %v359_v45 = vadd.f32 %v358_v43, %v282_v37  ;;  %v382_v47 = vsel %vm366_vm7, %v355_v34, %v374_v41  ;;  %vm367_vm8 = vcmp.ge.f32.partialorder %v357_v42, 0.0 }
  0xf1   : > { %v449_v48 = vadd.f32 %v382_v47, %v381_v46 }
  0xf2   : > { %vm368_vm9 = vcmp.ge.f32.partialorder %v359_v45, 0.0  ;;  %v376_v49 = vmul.f32 0.2, %v359_v45  ;;  %v383_v51 = vsel %vm367_vm8, %v357_v42, %v375_v44 }
  0xf3   : > { %450 = vadd.xlane.f32.xlu0 %v449_v48  ;;  %v387_v54 = vpack.c.bf16 %v383_v51, %v381_v46 }
  0xf4   : > { %v384_v50 = vsel %vm368_vm9, %v359_v45, %v376_v49 }
  0xf5   : > { %v388_v52 = vpack.c.bf16 %v384_v50, %v382_v47  ;;  %v452_v53 = vadd.f32 %v384_v50, %v383_v51 }
  0xf7   : > { %401 = vmatprep.subr.bf16.mxu0 %v388_v52  ;;  %631 = vmatprep.subr.bf16.mxu1 %v388_v52 }
  0xf8   : > { %429 = vmatprep.mubr.bf16.mxu1 %v388_v52  ;;  %453 = vadd.xlane.f32.xlu0 %v452_v53 }
  0xf9   : > { %402 = vmatpush1.bf16.xpose.msra.mxu0 %v387_v54  ;;  %633 = vmatpush1.bf16.xpose.msra.mxu1 %v387_v54 }
  0xfa   : > { %403 = vmatprep.subr.bf16.mxu0 %v386_v40  ;;  %632 = vmatprep.subr.bf16.mxu1 %v386_v40 }
 0x101   : > { %404 = vmatpush1.bf16.xpose.msra.mxu0 %v385_v55  ;;  %634 = vmatpush1.bf16.xpose.msra.mxu1 %v385_v55 }
 0x108   : > { %422 = vmatmul.mubr.bf16.vlgmr.msra.gmra.mxu0 %v385_v55  ;;  %430 = vmatmul.mubr.bf16.vlgmr.msra.gmra.mxu1 %v387_v54 }
 0x174   : > { %v445_v56 = vpop.xlane.xlu0 %444 }
 0x175   : > { %456 = vst.msk [vmem:[%s248_s8] sm:$0xff] %vm455_vm10, %v445_v56 }
 0x178   : > { %v448_v57 = vpop.xlane.xlu1 %447 }
 0x179   : > { %457 = vst.msk [vmem:[%s248_s8 + $0x8] sm:$0xff] %vm455_vm10, %v448_v57 }
 0x17c   : > { %v451_v58 = vpop.xlane.xlu0 %450 }
 0x17d   : > { %458 = vst.msk [vmem:[%s248_s8 + $0x10] sm:$0xff] %vm455_vm10, %v451_v58 }
 0x181   : > { %v454_v59 = vpop.xlane.xlu0 %453 }
 0x182   : > { %459 = vst.msk [vmem:[%s248_s8 + $0x18] sm:$0xff] %vm455_vm10, %v454_v59 }
 0x1c8   : > { %v423_v60 = vpop.f32.mrf.mxu0  ;;  %v431_v61 = vpop.f32.mrf.mxu1 }
 0x1c9   : > { %439 = vst.msk [vmem:[%s218_s11] sm:$0xff] %vm438_vm11, %v423_v60  ;;  %441 = vst.msk [vmem:[%s218_s11 + $0x10] sm:$0xff] %vm438_vm11, %v431_v61 }
 0x1ca   : > { %v425_v62 = vpop.f32.mrf.mxu0  ;;  %v433_v63 = vpop.f32.mrf.mxu1 }
 0x1cc   : > { %v426_v0 = vpop.f32.mrf.mxu0  ;;  %v434_v1 = vpop.f32.mrf.mxu1 }
 0x1cd   : > { %440 = vst.msk [vmem:[%s218_s11 + $0x8] sm:$0xff] %vm438_vm11, %v426_v0  ;;  %442 = vst.msk [vmem:[%s218_s11 + $0x18] sm:$0xff] %vm438_vm11, %v434_v1 }
 0x1ce   : > { %v428_v2 = vpop.f32.mrf.mxu0  ;;  %v436_v3 = vpop.f32.mrf.mxu1 }
 0x1cf   : > { %711 = shalt.err (!%p708_p5)
}
 0x1d0   : > { %s712_s5 = scalar_lea.hbm %s897_s21, 512  ;;  %s716_s8 = scalar_lea.hbm %s947_s3, 1024 }
 0x1d1   : > { %p713_p6 = scmp.ne.s32.totalorder %s897_s21, %s712_s5  ;;  %p717_p10 = scmp.lt.s32.totalorder %s897_s21, %s947_s3 }
 0x1d2   : > { %p718_p11 = scmp.lt.s32.totalorder %s716_s8, %s712_s5 }
 0x1d3   : > { %p714_p7 = pnand %p713_p6, %p845_p4 }
 0x1d4   : > { %p719_p12 = por %p718_p11, %p717_p10 }
 0x1d5   : > { %p715_p9 = pneg %p714_p7 }
 0x1d7   : > { %p720_p13 = pnand %p719_p12, %p715_p9 }
 0x1d9   : > { %723 = shalt.err (!%p720_p13)
}
 0x1da   : > { %s778_s11 = smov 128   ;;  %s779_s29 = smov 8  }
 0x1db   : > { %635 = dma.vmem_to_hbm [thread:$0]  (%p845_p4), %s892_s12, 512, %s897_s21, %s899_s18, %s778_s11, %s778_s11, %s779_s29  }
 0x1dc PF: > { %p641_p0 = scmp.ge.s32.totalorder %s774_s20, 2  ;;  %s503_s13 = sand.u32 1, %s754_s15  }
 0x1dd   : > { %s504_s14 = scalar_lea.sflag [#allocation3], %s503_s13 }
 0x1de   : > { %p638_p1 = pnand %p641_p0, %p852_p8 }
 0x1e0   : > { %p639_p2 = pneg %p638_p1 }
 0x1e2   : > { %749 = dma.done.wait (%p639_p2), %s504_s14, 512  }
 0x1e3   : > { %751 = vsyncadd (%p639_p2), %s504_s14, 4294966784  ;;  %s18_s20 = sadd.s32 1, %s774_s20   ;;  %s951_s15 = smov %s758_s16 }
 0x1e4   : > { %p15_p3 = scmp.ge.s32.totalorder %s18_s20, 4   ;;  %s952_s16 = smov %s762_s17 }
 0x1e5   : > { %s953_s17 = smov %s858_s28  ;;  %s954_s18 = smov %s770_s19 }
 0x1e6   : > { %s955_s19 = smov %s957_s23  ;;  %17 = sbr.rel (!%p15_p3) target bundleno = 4 (0x4), region = 79 }
 0x1eb   :  { %521 = vsyncpa [#allocation3], 1 }
 0x1ec   :  { %523 = vsyncpa [#allocation3 + $0x1], 1 }

</bundles_post_ra>
